<compile_context>
chip_gen: v6e
topology: v6e:2x2x1
jax: 0.10.0
libtpu: 0.0.40
codegen_flags: <defaults>
</compile_context>

<pallas_src>
import functools
import math

import jax
import jax.numpy as jnp
from jax.experimental import pallas as pl
from jax.experimental.pallas import tpu as pltpu


def _label_smoothing_kernel(t_ref, p_ref, out_ref, *,
                            confidence, smoothing_value, ignore_index,
                            row_tile, const_row, n_rows):
    """Writes the per-row KL contribution (row_tile, 1) for this block's rows.

    Algebraic collapse (per valid row, target t != ignore_index):
        sum_j mprob_j * (log mprob_j - logp_j)
          = const_row - confidence*logp[t]
            - smoothing_value*(sum_j logp_j - logp[ignore] - logp[t])
    with const_row = confidence*log(confidence) + (C-2)*smoothing_value*log(smoothing_value).
    Rows with target == ignore_index, and rows past N in the ragged tail block, contribute 0.
    """
    i = pl.program_id(0)
    row0 = i * row_tile

    logits = p_ref[...].astype(jnp.float32)                  # (row_tile, C)
    C = logits.shape[-1]

    tgt = t_ref[...]                                          # (row_tile, 1) int32

    col = jax.lax.broadcasted_iota(jnp.int32, (1, C), 1)      # (1, C)
    is_tgt_col = col == tgt                                   # (row_tile, C)

    # Per-row scalars computed directly on `logits` (adjusted by lse afterwards) so the
    # sub->exp->sum chain below is the only full-tile temporary that must stay live.
    logits_t = jnp.sum(jnp.where(is_tgt_col, logits, 0.0), axis=-1, keepdims=True)
    logits_ign = logits[:, ignore_index:ignore_index + 1]     # static lane slice
    rowsum_logits = jnp.sum(logits, axis=-1, keepdims=True)

    # Numerically-stable full logsumexp; the logp tile is never materialized.
    m = jnp.max(logits, axis=-1, keepdims=True)
    sum_exp = jnp.sum(jnp.exp(logits - m), axis=-1, keepdims=True)
    lse = m + jnp.log(sum_exp)                                # (row_tile, 1)

    logp_t = logits_t - lse
    logp_ign = logits_ign - lse
    rowsum_logp = rowsum_logits - C * lse

    kl_row = (const_row
              - confidence * logp_t
              - smoothing_value * (rowsum_logp - logp_ign - logp_t))

    # Mask: ignored rows AND rows past N in the ragged tail block (garbage data there is
    # confined to its own row since all reductions are per-row).
    row_idx = row0 + jax.lax.broadcasted_iota(jnp.int32, (row_tile, 1), 0)
    valid = (row_idx < n_rows) & (tgt != ignore_index)
    kl_row = jnp.where(valid, kl_row, 0.0)

    out_ref[...] = kl_row.astype(out_ref.dtype)


def label_smoothing_loss(predictions, target, *, label_smoothing=0.1,
                         ignore_index=0, row_tile=None):
    """predictions: (N, C) float logits. target: (N,) int. Returns scalar f32 loss."""
    N, C = predictions.shape
    if C <= 2:
        raise ValueError("trg_vocab_size must be > 2 (label smoothing divides by C-2)")
    confidence = 1.0 - label_smoothing
    smoothing_value = label_smoothing / (C - 2)

    # sum_j mprob_j * log(mprob_j) for a valid (non-ignored) row — compile-time constant.
    const_row = 0.0
    if confidence > 0.0:
        const_row += confidence * math.log(confidence)
    if smoothing_value > 0.0:
        const_row += (C - 2) * smoothing_value * math.log(smoothing_value)

    # Sublane multiple for the logits dtype (f32: 8, bf16: 16, 8-bit: 32).
    itemsize = jnp.dtype(predictions.dtype).itemsize
    sub = {4: 8, 2: 16, 1: 32}.get(itemsize, 8)

    if row_tile is None:
        # ~4 MiB per (row_tile, C) logits block: big enough to amortize the ~0.35 us
        # per-grid-step overhead, small enough that double-buffered inputs + full-tile
        # f32 temps stay well inside v7x's 64 MiB VMEM (and trivially in 128 MiB parts).
        cap = max(sub, ((4 * 1024 * 1024) // (C * itemsize)) // sub * sub)
        # Cap at ~ceil(N/2) rows so there are >= 2 grid blocks whenever possible, letting
        # the "parallel" grid axis use both TensorCores on v7x.
        half = max(sub, ((N + 1) // 2 + sub - 1) // sub * sub)
        row_tile = min(cap, half)
    row_tile = max(sub, (row_tile // sub) * sub)

    num_blocks = pl.cdiv(N, row_tile)          # ragged tail handled in-kernel, no padding

    tgt2d = target.astype(jnp.int32).reshape(N, 1)

    kernel = functools.partial(
        _label_smoothing_kernel,
        confidence=confidence,
        smoothing_value=smoothing_value,
        ignore_index=ignore_index,
        row_tile=row_tile,
        const_row=const_row,
        n_rows=N,
    )

    per_row = pl.pallas_call(
        kernel,
        out_shape=jax.ShapeDtypeStruct((N, 1), jnp.float32),
        grid_spec=pltpu.PrefetchScalarGridSpec(
            num_scalar_prefetch=0,
            grid=(num_blocks,),
            in_specs=[
                # Per-block target slice (tiny; DMA hides under the logits DMA).
                pl.BlockSpec((row_tile, 1), lambda i: (i, 0)),
                # Logits tile (full-C rows).
                pl.BlockSpec((row_tile, C), lambda i: (i, 0)),
            ],
            out_specs=pl.BlockSpec((row_tile, 1), lambda i: (i, 0)),
        ),
        compiler_params=pltpu.CompilerParams(
            dimension_semantics=("parallel",),     # independent blocks: both TCs on v7x
            vmem_limit_bytes=40 * 1024 * 1024,     # safe on v7x's 64 MiB VMEM
        ),
    )(tgt2d, predictions)

    # reduction='mean' in KLDivLoss divides by numel of the input: N*C.
    return jnp.sum(per_row) / (N * C)


def _reference(predictions, target, *, label_smoothing=0.1, ignore_index=0):
    """Pure-JAX reference mirroring the PyTorch module."""
    N, C = predictions.shape
    confidence = 1.0 - label_smoothing
    smoothing_value = label_smoothing / (C - 2)
    logp = jax.nn.log_softmax(predictions.astype(jnp.float32), axis=-1)
    one_hot = jnp.full((C,), smoothing_value, jnp.float32).at[ignore_index].set(0.0)
    mprob = jnp.tile(one_hot[None, :], (N, 1))
    mprob = mprob.at[jnp.arange(N), target].set(confidence)
    mprob = jnp.where((target == ignore_index)[:, None], 0.0, mprob)
    kl = jnp.where(mprob > 0, mprob * (jnp.log(jnp.maximum(mprob, 1e-30)) - logp), 0.0)
    return jnp.sum(kl) / (N * C)


if __name__ == "__main__":
    # small shapes: N=16 tokens, vocab C=128
    N, C = 16, 128
    key = jax.random.PRNGKey(0)
    k1, k2 = jax.random.split(key)
    predictions = jax.random.normal(k1, (N, C), dtype=jnp.float32)
    target = jax.random.randint(k2, (N,), 0, C, dtype=jnp.int32)
    # force a couple of padding (ignore_index=0) positions
    target = target.at[0].set(0).at[5].set(0)

    loss = label_smoothing_loss(predictions, target)
    jax.block_until_ready(loss)

    ref = _reference(predictions, target)
    assert jnp.allclose(loss, ref, rtol=2e-4, atol=1e-6), (loss, ref)

    # Also exercise a ragged-tail case (N not a multiple of the row tile).
    N2 = 23
    k3, k4 = jax.random.split(k2)
    preds2 = jax.random.normal(k3, (N2, C), dtype=jnp.float32)
    tgt2 = jax.random.randint(k4, (N2,), 0, C, dtype=jnp.int32).at[3].set(0)
    loss2 = label_smoothing_loss(preds2, tgt2)
    jax.block_until_ready(loss2)
    ref2 = _reference(preds2, tgt2)
    assert jnp.allclose(loss2, ref2, rtol=2e-4, atol=1e-6), (loss2, ref2)

    print("KERNEL_OK")
</pallas_src>

<mosaic_0001>
module attributes {stable_mosaic.version = 11 : i64} {
  func.func @_label_smoothing_kernel(%arg0: i32, %arg1: memref<8x1xi32, #tpu.memory_space<vmem>>, %arg2: memref<8x128xf32, #tpu.memory_space<vmem>>, %arg3: memref<8x1xf32, #tpu.memory_space<vmem>>) attributes {dimension_semantics = [#tpu.dimension_semantics<parallel>], iteration_bounds = array<i64: 2>, scalar_prefetch = 0 : i64, scratch_operands = 0 : i64, tpu.core_type = #tpu.core_type<tc>, window_params = [{transform_indices = @transform_0, window_bounds = array<i64: 8, 1>}, {transform_indices = @transform_1, window_bounds = array<i64: 8, 128>}, {transform_indices = @transform_2, window_bounds = array<i64: 8, 1>}]} {
    %c8_i32 = arith.constant 8 : i32
    %0 = arith.muli %arg0, %c8_i32 : i32
    %c0 = arith.constant 0 : index
    %c0_0 = arith.constant 0 : index
    %1 = vector.load %arg2[%c0, %c0_0] : memref<8x128xf32, #tpu.memory_space<vmem>>, vector<8x128xf32>
    %c0_1 = arith.constant 0 : index
    %c0_2 = arith.constant 0 : index
    %2 = vector.load %arg1[%c0_1, %c0_2] : memref<8x1xi32, #tpu.memory_space<vmem>>, vector<8x1xi32>
    %3 = tpu.iota {dimensions = array<i32: 1>} : vector<1x128xi32>
    %4 = vector.broadcast %3 : vector<1x128xi32> to vector<8x128xi32>
    %5 = vector.broadcast %2 : vector<8x1xi32> to vector<8x128xi32>
    %6 = arith.cmpi eq, %4, %5 : vector<8x128xi32>
    %cst = arith.constant 0.000000e+00 : f32
    %7 = vector.broadcast %cst : f32 to vector<8x128xf32>
    %8 = arith.select %6, %1, %7 : vector<8x128xi1>, vector<8x128xf32>
    %cst_3 = arith.constant dense<0.000000e+00> : vector<8xf32>
    %9 = vector.multi_reduction <add>, %8, %cst_3 [1] : vector<8x128xf32> to vector<8xf32>
    %10 = vector.shape_cast %9 : vector<8xf32> to vector<8x1xf32>
    %11 = vector.extract_strided_slice %1 {offsets = [0, 0], sizes = [8, 1], strides = [1, 1]} : vector<8x128xf32> to vector<8x1xf32>
    %cst_4 = arith.constant dense<0.000000e+00> : vector<8xf32>
    %12 = vector.multi_reduction <add>, %1, %cst_4 [1] : vector<8x128xf32> to vector<8xf32>
    %13 = vector.shape_cast %12 : vector<8xf32> to vector<8x1xf32>
    %cst_5 = arith.constant dense<0xFF800000> : vector<8xf32>
    %14 = vector.multi_reduction <maximumf>, %1, %cst_5 [1] : vector<8x128xf32> to vector<8xf32>
    %15 = vector.shape_cast %14 : vector<8xf32> to vector<8x1xf32>
    %16 = vector.broadcast %15 : vector<8x1xf32> to vector<8x128xf32>
    %17 = arith.subf %1, %16 : vector<8x128xf32>
    %18 = math.exp %17 : vector<8x128xf32>
    %cst_6 = arith.constant dense<0.000000e+00> : vector<8xf32>
    %19 = vector.multi_reduction <add>, %18, %cst_6 [1] : vector<8x128xf32> to vector<8xf32>
    %20 = vector.shape_cast %19 : vector<8xf32> to vector<8x1xf32>
    %21 = math.log %20 : vector<8x1xf32>
    %22 = arith.addf %15, %21 : vector<8x1xf32>
    %23 = arith.subf %10, %22 : vector<8x1xf32>
    %24 = arith.subf %11, %22 : vector<8x1xf32>
    %cst_7 = arith.constant 1.280000e+02 : f32
    %25 = vector.broadcast %cst_7 : f32 to vector<8x1xf32>
    %26 = arith.mulf %25, %22 : vector<8x1xf32>
    %27 = arith.subf %13, %26 : vector<8x1xf32>
    %cst_8 = arith.constant 0.899999976 : f32
    %28 = vector.broadcast %cst_8 : f32 to vector<8x1xf32>
    %29 = arith.mulf %28, %23 : vector<8x1xf32>
    %cst_9 = arith.constant -0.808711171 : f32
    %30 = vector.broadcast %cst_9 : f32 to vector<8x1xf32>
    %31 = arith.subf %30, %29 : vector<8x1xf32>
    %32 = arith.subf %27, %24 : vector<8x1xf32>
    %33 = arith.subf %32, %23 : vector<8x1xf32>
    %cst_10 = arith.constant 7.93650805E-4 : f32
    %34 = vector.broadcast %cst_10 : f32 to vector<8x1xf32>
    %35 = arith.mulf %34, %33 : vector<8x1xf32>
    %36 = arith.subf %31, %35 : vector<8x1xf32>
    %37 = tpu.iota {dimensions = array<i32: 0>} : vector<8x1xi32>
    %38 = vector.broadcast %0 : i32 to vector<8x1xi32>
    %39 = arith.addi %38, %37 : vector<8x1xi32>
    %c16_i32 = arith.constant 16 : i32
    %40 = vector.broadcast %c16_i32 : i32 to vector<8x1xi32>
    %41 = arith.cmpi slt, %39, %40 : vector<8x1xi32>
    %c0_i32 = arith.constant 0 : i32
    %42 = vector.broadcast %c0_i32 : i32 to vector<8x1xi32>
    %43 = arith.cmpi ne, %2, %42 : vector<8x1xi32>
    %44 = arith.andi %41, %43 : vector<8x1xi1>
    %cst_11 = arith.constant 0.000000e+00 : f32
    %45 = vector.broadcast %cst_11 : f32 to vector<8x1xf32>
    %46 = arith.select %44, %36, %45 : vector<8x1xi1>, vector<8x1xf32>
    %c0_12 = arith.constant 0 : index
    %c0_13 = arith.constant 0 : index
    %47 = vector.load %arg3[%c0_12, %c0_13] : memref<8x1xf32, #tpu.memory_space<vmem>>, vector<8x1xf32>
    tpu.vector_store %arg3[%c0_12, %c0_13], %46 {strides = array<i32>} : memref<8x1xf32, #tpu.memory_space<vmem>>, vector<8x1xf32>,
    return
  }
  func.func @transform_0(%arg0: i32) -> (i32, i32) {
    %c0_i32 = arith.constant 0 : i32
    %c0_i32_0 = arith.constant 0 : i32
    return %arg0, %c0_i32 : i32, i32
  }
  func.func @transform_1(%arg0: i32) -> (i32, i32) {
    %c0_i32 = arith.constant 0 : i32
    %c0_i32_0 = arith.constant 0 : i32
    return %arg0, %c0_i32 : i32, i32
  }
  func.func @transform_2(%arg0: i32) -> (i32, i32) {
    %c0_i32 = arith.constant 0 : i32
    %c0_i32_0 = arith.constant 0 : i32
    return %arg0, %c0_i32 : i32, i32
  }
}

</mosaic_0001>

<bundles_post_ra>
// kernel: tpu_custom_call.1
= control target key start
LH: loop header
LB: loop body
LE: loop exit
PB: predicated region body
PF: predicated region fallthrough
CT: control target
= control target key end

     0   :  { %s314_s9 = smov 0   ;;  %s345_s0 = inlined_call_operand.vmem [shape: s32[16,1], index: 0, kind: input, shape index: {}]   ;;  %s346_s1 = inlined_call_operand.vmem [shape: f32[16,128], index: 1, kind: input, shape index: {}]   ;;  %s347_s2 = inlined_call_operand.vmem [shape: f32[16,1], index: 2, kind: output, shape index: {}]  }
   0x1 LB: > { %s265_s10 = sadd.s32 4294967295, %s296_s9   ;;  %p269_p0 = scmp.ge.s32.totalorder %s296_s9, 1  ;;  %s296_s9 = sphi %s314_s9, %s12_s9  }
   0x2   : > { %p120_p1 = scmp.lt.s32.totalorder %s296_s9, 3 }
   0x4   : > { %p121_p2 = pnand %p269_p0, %p120_p1 }
   0x5   : > { %p144_p3 = scmp.lt.s32.totalorder (!%p121_p2), %s265_s10, 1  ;;  %s273_s11 = sshll.u32 (!%p121_p2), %s265_s10, 3 }
   0x6   : > { %124 = sbr.rel (%p121_p2) target bundleno = 341 (0x155), region = 28 }
   0xb   : > { %v159_v0 = vlaneseq  ;;  %v298_v1 = vmov 0   ;;  %v192_v2 = vstv %s273_s11  ;;  %s351_s10 = smov (!%p144_p3, %s265_s10), 1  ;;  %vm198_vm4 = vcmask 7168  }
   0xc   : > { %285 = vset.pattern.permute.xlu0 %v298_v1  ;;  %s322_s12 = sshll.u32 %s351_s10, 3 }
   0xd   : > { %v191_v3 = vshrl.u32 %v159_v0, 7  ;;  %s151_s15 = scalar_lea.vmem %s346_s1, %s322_s12  ;;  %s147_s18 = scalar_lea.vmem %s345_s0, %s322_s12  ;;  %v160_v11 = vand.u32 127, %v159_v0 }
   0xe   : > { %v157_v5 = vld [vmem:[%s151_s15] sm:$0xff]  ;;  %s155_s21 = scalar_lea.vmem %s347_s2, %s322_s12 }
   0xf   : > { %v193_v4 = vadd.s32 %v192_v2, %v191_v3  ;;  %170 = vmax.xlane.f32.xlu0 %v157_v5  ;;  %v158_v6 = vld [vmem:[%s147_s18] sm:$0xff] }
  0x10   : > { %vm195_vm1 = vcmp.ne.s32.totalorder %v158_v6, 0 }
  0x11   : > { %vm194_vm0 = vcmp.lt.s32.totalorder %v193_v4, 16 }
  0x12   : > { %vm332_vm2 = vmand %vm194_vm0, %vm195_vm1 }
  0x25   : > { %162 = vperm.xlu0 %285, %v158_v6  }
  0x98   : > { %v171_v8 = vpop.xlane.xlu0 %170 }
  0x99   : > { %v172_v9 = vsub.f32 %v157_v5, %v171_v8 }
  0x9b   : > { %v173_v10 = vmul.f32 1.442695, %v172_v9 }
  0x9d   : > { %286 = vpow2.f32 %v173_v10 }
  0xa0   : > { %v163_v13 = vpop.permute.xlu0 %162 }
  0xa1   : > { %vm164_vm3 = vcmp.eq.s32.totalorder %v160_v11, %v163_v13 }
  0xa2   : > { %v165_v14 = vsel %vm164_vm3, %v157_v5, 0.0 }
  0xaa   : > { %v287_v12 = vpop.eup %286 }
  0xab   : > { %175 = vadd.xlane.f32.xlu1 %v287_v12 }
  0xaf   : > { %168 = vadd.xlane.f32.xlu1 %v157_v5 }
  0xb3   : > { %166 = vadd.xlane.f32.xlu1 %v165_v14 }
 0x134   : > { %v176_v15 = vpop.xlane.xlu1 %175 }
 0x135   : > { %288 = vlog2.f32 %v176_v15 }
 0x138   : > { %v169_v16 = vpop.xlane.xlu1 %168 }
 0x13c   : > { %v167_v19 = vpop.xlane.xlu1 %166 }
 0x142   : > { %v289_v17 = vpop.eup %288 }
 0x143   : > { %v178_v18 = vmul.f32 0.6931472, %v289_v17 }
 0x145   : > { %v179_v20 = vadd.f32 %v178_v18, %v171_v8 }
 0x147   : > { %v182_v21 = vmul.f32 128.0, %v179_v20  ;;  %v180_v22 = vsub.f32 %v167_v19, %v179_v20  ;;  %v181_v23 = vsub.f32 %v157_v5, %v179_v20 }
 0x149   : > { %v183_v24 = vsub.f32 %v169_v16, %v182_v21  ;;  %v184_v26 = vmul.f32 0.9, %v180_v22 }
 0x14b   : > { %v186_v25 = vsub.f32 %v183_v24, %v181_v23  ;;  %v185_v28 = vsub.f32 -0.8087112, %v184_v26 }
 0x14d   : > { %v187_v27 = vsub.f32 %v186_v25, %v180_v22 }
 0x14f   : > { %v188_v29 = vmul.f32 0.0007936508, %v187_v27 }
 0x151   : > { %v189_v30 = vsub.f32 %v185_v28, %v188_v29 }
 0x153   : > { %v197_v31 = vsel %vm332_vm2, %v189_v30, 0.0 }
 0x154   : > { %199 = vst.msk [vmem:[%s155_s21] sm:$0xff] %vm198_vm4, %v197_v31 }
 0x155 PF: > { %s12_s9 = sadd.s32 1, %s296_s9  }
 0x156   : > { %p9_p4 = scmp.ge.s32.totalorder %s12_s9, 4  }
 0x158   :  { %11 = sbr.rel (!%p9_p4) target bundleno = 1 (0x1), region = 61 }

</bundles_post_ra>
